<compile_context>
chip_gen: v7x
topology: tpu7x:2x2x1
jax: 0.10.0
libtpu: 0.0.40
codegen_flags: <defaults>
</compile_context>

<pallas_src>
import functools

import jax
import jax.numpy as jnp
from jax import lax
from jax.experimental import pallas as pl
from jax.experimental.pallas import tpu as pltpu

IN_F = 10
HID_F = 20
OUT_F = 20

_MAX_TB = 16 * 1024  # batch-lane tile cap (rows of the logical batch)


def _round_up(n, m):
    return ((n + m - 1) // m) * m


def _padded_block_bytes(rows, cols):
    # f32 VMEM footprint of a (rows, cols) block after (8, 128) tiling.
    return _round_up(rows, 8) * _round_up(cols, 128) * 4


def _gelu_exact(x):
    # Exact GELU: 0.5 * x * (1 + erf(x / sqrt(2)))  (nn.GELU(approximate='none'))
    return 0.5 * x * (1.0 + lax.erf(x * (1.0 / jnp.sqrt(2.0).astype(x.dtype))))


def mlp_kernel(xt_ref, w1_ref, w2_ref, ot_ref):
    xt = xt_ref[...]    # (IN_F, TB)      f32, batch on lanes
    w1 = w1_ref[...]    # (HID_F, IN_F)   f32 (PyTorch layout, resident)
    w2 = w2_ref[...]    # (OUT_F, HID_F)  f32 (PyTorch layout, resident)

    h = jnp.dot(w1, xt, preferred_element_type=jnp.float32)   # (HID_F, TB)
    h = _gelu_exact(h)
    y = jnp.dot(w2, h, preferred_element_type=jnp.float32)    # (OUT_F, TB)
    y = _gelu_exact(y)

    ot_ref[...] = y.astype(ot_ref.dtype)                      # full-lane store


@functools.partial(jax.jit, static_argnames=())
def mlp_forward(x, w1, w2):
    """x: (B, 10) f32; w1: (20, 10); w2: (20, 20)  (PyTorch layout). -> (B, 20)."""
    B = x.shape[0]

    # Feature-major input so the batch rides on the lane axis inside the kernel.
    xt = x.T  # (IN_F, B)

    # Batch tile: full extent for small B (single block), otherwise a multiple
    # of 128 sized for >= ~8 grid steps (v7x dual-TC sharding) and capped so
    # double-buffered blocks + intermediates fit scoped VMEM on every gen.
    if B <= 128:
        tb = B
    else:
        tb = min(_MAX_TB, max(128, _round_up(pl.cdiv(B, 8), 128)))

    grid = (pl.cdiv(B, tb),)

    # Actual padded-tile VMEM budget: 2x double-buffered x / out blocks,
    # plus the materialized h and y intermediates, plus resident weights.
    vmem_bytes = (
        2 * _padded_block_bytes(IN_F, tb)
        + 2 * _padded_block_bytes(OUT_F, tb)
        + 2 * _padded_block_bytes(HID_F, tb)
        + _padded_block_bytes(HID_F, IN_F)
        + _padded_block_bytes(OUT_F, HID_F)
    )
    # 2x headroom + margin, clamped well under v7x's 64 MiB physical VMEM.
    vmem_limit = int(min(max(2 * vmem_bytes + (8 << 20), 32 << 20), 56 << 20))

    # Advisory cost from the tiled/padded layout actually moved.
    b_lanes = _round_up(B, 128)
    bytes_moved = 4 * (
        _round_up(IN_F, 8) * b_lanes          # x.T read
        + _round_up(OUT_F, 8) * b_lanes       # output write
        + _padded_block_bytes(HID_F, IN_F) // 4
        + _padded_block_bytes(OUT_F, HID_F) // 4
    )
    cost = pl.CostEstimate(
        flops=2 * B * (IN_F * HID_F + HID_F * OUT_F),
        transcendentals=B * (HID_F + OUT_F),
        bytes_accessed=bytes_moved,
    )

    out_t = pl.pallas_call(
        mlp_kernel,
        out_shape=jax.ShapeDtypeStruct((OUT_F, B), jnp.float32),
        grid=grid,
        in_specs=[
            pl.BlockSpec((IN_F, tb), lambda i: (0, i)),       # x.T batch tile
            pl.BlockSpec((HID_F, IN_F), lambda i: (0, 0)),    # W1 (resident)
            pl.BlockSpec((OUT_F, HID_F), lambda i: (0, 0)),   # W2 (resident)
        ],
        out_specs=pl.BlockSpec((OUT_F, tb), lambda i: (0, i)),
        compiler_params=pltpu.CompilerParams(
            dimension_semantics=("parallel",),
            vmem_limit_bytes=vmem_limit,
        ),
        cost_estimate=cost,
    )(xt, w1, w2)

    return out_t.T  # (B, OUT_F)


def init_params(key):
    # Deterministic synthetic init (PyTorch would use kaiming-uniform; any
    # deterministic values are fine for this synthetic kernel).
    k1, k2 = jax.random.split(key)
    bound1 = 1.0 / jnp.sqrt(IN_F)
    bound2 = 1.0 / jnp.sqrt(HID_F)
    w1 = jax.random.uniform(k1, (HID_F, IN_F), jnp.float32, -bound1, bound1)
    w2 = jax.random.uniform(k2, (OUT_F, HID_F), jnp.float32, -bound2, bound2)
    return w1, w2


def mlp_reference(x, w1, w2):
    h = _gelu_exact(x @ w1.T)
    return _gelu_exact(h @ w2.T)


if __name__ == "__main__":
    key = jax.random.PRNGKey(0)
    kx, kp = jax.random.split(key)
    w1, w2 = init_params(kp)

    # Small batch: single full-extent block.
    B = 8
    x = jax.random.normal(kx, (B, IN_F), jnp.float32)
    out = jax.block_until_ready(mlp_forward(x, w1, w2))
    ref = mlp_reference(x, w1, w2)
    assert out.shape == (B, OUT_F)
    assert jnp.allclose(out, ref, atol=1e-5, rtol=1e-5), "mismatch vs reference"

    # Larger batch: multi-step grid with a ragged last block (no jnp.pad copy).
    B2 = 300
    x2 = jax.random.normal(jax.random.PRNGKey(7), (B2, IN_F), jnp.float32)
    out2 = jax.block_until_ready(mlp_forward(x2, w1, w2))
    ref2 = mlp_reference(x2, w1, w2)
    assert out2.shape == (B2, OUT_F)
    assert jnp.allclose(out2, ref2, atol=1e-5, rtol=1e-5), "mismatch (ragged batch)"

    print("KERNEL_OK")
</pallas_src>

<mosaic_0001>
module attributes {stable_mosaic.version = 11 : i64} {
  func.func @mlp_kernel(%arg0: i32, %arg1: memref<10x8xf32, #tpu.memory_space<vmem>>, %arg2: memref<20x10xf32, #tpu.memory_space<vmem>>, %arg3: memref<20x20xf32, #tpu.memory_space<vmem>>, %arg4: memref<20x8xf32, #tpu.memory_space<vmem>>) attributes {dimension_semantics = [#tpu.dimension_semantics<parallel>], iteration_bounds = array<i64: 1>, scalar_prefetch = 0 : i64, scratch_operands = 0 : i64, tpu.core_type = #tpu.core_type<tc>, window_params = [{transform_indices = @transform_0, window_bounds = array<i64: 10, 8>}, {pipeline_mode = #tpu.pipeline_mode<synchronous>, transform_indices = @transform_1, window_bounds = array<i64: 20, 10>}, {pipeline_mode = #tpu.pipeline_mode<synchronous>, transform_indices = @transform_2, window_bounds = array<i64: 20, 20>}, {transform_indices = @transform_3, window_bounds = array<i64: 20, 8>}]} {
    %c0 = arith.constant 0 : index
    %c0_0 = arith.constant 0 : index
    %0 = vector.load %arg1[%c0, %c0_0] : memref<10x8xf32, #tpu.memory_space<vmem>>, vector<10x8xf32>
    %c0_1 = arith.constant 0 : index
    %c0_2 = arith.constant 0 : index
    %1 = vector.load %arg2[%c0_1, %c0_2] : memref<20x10xf32, #tpu.memory_space<vmem>>, vector<20x10xf32>
    %c0_3 = arith.constant 0 : index
    %c0_4 = arith.constant 0 : index
    %2 = vector.load %arg3[%c0_3, %c0_4] : memref<20x20xf32, #tpu.memory_space<vmem>>, vector<20x20xf32>
    %cst = arith.constant dense<0.000000e+00> : vector<20x8xf32>
    %3 = tpu.matmul %1, %0, %cst {dimension_numbers = #tpu.dot_dimension_numbers<[1], [0], [0], [1], [0, 0, 1, 1], [], []>} : vector<20x10xf32>, vector<10x8xf32>, vector<20x8xf32> -> vector<20x8xf32>
    %cst_5 = arith.constant 5.000000e-01 : f32
    %4 = vector.broadcast %cst_5 : f32 to vector<20x8xf32>
    %5 = arith.mulf %4, %3 : vector<20x8xf32>
    %cst_6 = arith.constant 2.000000e+00 : f32
    %6 = math.sqrt %cst_6 : f32
    %cst_7 = arith.constant 1.000000e+00 : f32
    %7 = arith.divf %cst_7, %6 : f32
    %8 = vector.broadcast %7 : f32 to vector<20x8xf32>
    %9 = arith.mulf %3, %8 : vector<20x8xf32>
    %10 = math.erf %9 : vector<20x8xf32>
    %cst_8 = arith.constant 1.000000e+00 : f32
    %11 = vector.broadcast %cst_8 : f32 to vector<20x8xf32>
    %12 = arith.addf %11, %10 : vector<20x8xf32>
    %13 = arith.mulf %5, %12 : vector<20x8xf32>
    %cst_9 = arith.constant dense<0.000000e+00> : vector<20x8xf32>
    %14 = tpu.matmul %2, %13, %cst_9 {dimension_numbers = #tpu.dot_dimension_numbers<[1], [0], [0], [1], [0, 0, 1, 1], [], []>} : vector<20x20xf32>, vector<20x8xf32>, vector<20x8xf32> -> vector<20x8xf32>
    %cst_10 = arith.constant 5.000000e-01 : f32
    %15 = vector.broadcast %cst_10 : f32 to vector<20x8xf32>
    %16 = arith.mulf %15, %14 : vector<20x8xf32>
    %cst_11 = arith.constant 2.000000e+00 : f32
    %17 = math.sqrt %cst_11 : f32
    %cst_12 = arith.constant 1.000000e+00 : f32
    %18 = arith.divf %cst_12, %17 : f32
    %19 = vector.broadcast %18 : f32 to vector<20x8xf32>
    %20 = arith.mulf %14, %19 : vector<20x8xf32>
    %21 = math.erf %20 : vector<20x8xf32>
    %cst_13 = arith.constant 1.000000e+00 : f32
    %22 = vector.broadcast %cst_13 : f32 to vector<20x8xf32>
    %23 = arith.addf %22, %21 : vector<20x8xf32>
    %24 = arith.mulf %16, %23 : vector<20x8xf32>
    %c0_14 = arith.constant 0 : index
    %c0_15 = arith.constant 0 : index
    %25 = vector.load %arg4[%c0_14, %c0_15] : memref<20x8xf32, #tpu.memory_space<vmem>>, vector<20x8xf32>
    tpu.vector_store %arg4[%c0_14, %c0_15], %24 {strides = array<i32>} : memref<20x8xf32, #tpu.memory_space<vmem>>, vector<20x8xf32>,
    return
  }
  func.func @transform_0(%arg0: i32) -> (i32, i32) {
    %c0_i32 = arith.constant 0 : i32
    %c0_i32_0 = arith.constant 0 : i32
    return %c0_i32, %arg0 : i32, i32
  }
  func.func @transform_1(%arg0: i32) -> (i32, i32) {
    %c0_i32 = arith.constant 0 : i32
    %c0_i32_0 = arith.constant 0 : i32
    %c0_i32_1 = arith.constant 0 : i32
    return %c0_i32, %c0_i32_0 : i32, i32
  }
  func.func @transform_2(%arg0: i32) -> (i32, i32) {
    %c0_i32 = arith.constant 0 : i32
    %c0_i32_0 = arith.constant 0 : i32
    %c0_i32_1 = arith.constant 0 : i32
    return %c0_i32, %c0_i32_0 : i32, i32
  }
  func.func @transform_3(%arg0: i32) -> (i32, i32) {
    %c0_i32 = arith.constant 0 : i32
    %c0_i32_0 = arith.constant 0 : i32
    return %c0_i32, %arg0 : i32, i32
  }
}

</mosaic_0001>

<bundles_post_ra>
// kernel: mlp_forward.1
= control target key start
LH: loop header
LB: loop body
LE: loop exit
PB: predicated region body
PF: predicated region fallthrough
CT: control target
= control target key end

     0   :  { %vm32_vm0 = vcmask 1041408   ;;  %v319_v0 = vmov 0.0|0.0   ;;  %vm320_vm1 = vmmov 1   ;;  %vm321_vm3 = vmmov 0   ;;  %s382_s0 = inlined_call_operand.vmem [shape: f32[10,8], index: 0, kind: input, shape index: {}]   ;;  %s383_s1 = inlined_call_operand.vmem [shape: f32[20,10], index: 1, kind: input, shape index: {}]   ;;  %s384_s2 = inlined_call_operand.vmem [shape: f32[20,20], index: 2, kind: input, shape index: {}]   ;;  %s385_s3 = inlined_call_operand.vmem [shape: f32[20,8], index: 3, kind: output, shape index: {}]  }
   0x1   :  { %296 = vmatprep.subr.bf16.mxu0 %v319_v0  ;;  %v14_v1 = vld [vmem:[%s382_s0] sm:$0xff]  ;;  %v15_v2 = vld [vmem:[%s382_s0 + $0x8] sm:$0x3]  ;;  %vm298_vm2 = vmpackc.low %vm32_vm0, %vm320_vm1  ;;  %300 = vmatprep.subr.bf16.mxu1 %v319_v0  ;;  %v322_v4 = vmov 0.0   ;;  %vm22_vm4 = vcmask 80896   ;;  %vm141_vm5 = vcmask 1043456  }
   0x2   :  { %v297_v3 = vpack.c.bf16 %v15_v2, %v14_v1  ;;  %272 = vmatprep.mubr.msk.f32.mxu0 %vm321_vm3, %v322_v4  ;;  %287 = vmatprep.mubr.msk.f32.mxu1 %vm321_vm3, %v322_v4  ;;  %v16_v5 = vld [vmem:[%s383_s1] sm:$0xff]  ;;  %v17_v6 = vld [vmem:[%s383_s1 + $0x8] sm:$0xff]  ;;  %v18_v7 = vld [vmem:[%s383_s1 + $0x10] sm:$0xf]  ;;  %vm131_vm6 = vcmask 162816   ;;  %vm240_vm7 = vcmask 64512  }
   0x3   :  { %v19_v30 = vld [vmem:[%s384_s2] sm:$0xff]  ;;  %v20_v31 = vld [vmem:[%s384_s2 + $0x8] sm:$0xff]  ;;  %v21_v32 = vld [vmem:[%s384_s2 + $0x10] sm:$0xf]  ;;  %vm243_vm8 = vcmask 60416  }
   0x4   :  { %299 = vmatpush3.bf16.msk.msra.mxu0 %vm298_vm2, %v297_v3 }
   0x7   :  { %273 = vmatmul.mubr.msk.f32.vlgmr.msra.gmra.mrb[0].mxu0 %vm22_vm4, %v16_v5 }
   0x8   :  { %275 = vmatprep.mubr.msk.f32.mxu0 %vm321_vm3, %v322_v4 }
   0xb   :  { %276 = vmatmul.mubr.msk.f32.gmra.mrb[2].mxu0 %vm22_vm4, %v17_v6 }
   0xc   :  { %278 = vmatprep.mubr.msk.f32.mxu0 %vm321_vm3, %v322_v4 }
   0xf   :  { %279 = vmatmul.mubr.msk.f32.gmra.mrb[4].mxu0 %vm22_vm4, %v18_v7 }
  0xda   :  { %v102_v8 = vpop.f32.mrb[0].mxu0 }
  0xdb   :  { %v119_v9 = vmul.f32 0.70710677, %v102_v8  ;;  %v274_v10 = vpop.f32.mrb[1].mxu0  ;;  %v116_v20 = vmul.f32 0.5, %v102_v8 }
  0xdd   :  { %307 = verf.f32 %v119_v9 }
  0xde   :  { %v107_v11 = vpop.f32.mrb[2].mxu0 }
  0xdf   :  { %v120_v12 = vmul.f32 0.70710677, %v107_v11  ;;  %v277_v13 = vpop.f32.mrb[3].mxu0  ;;  %v117_v21 = vmul.f32 0.5, %v107_v11 }
  0xe1   :  { %309 = verf.f32 %v120_v12 }
  0xe2   :  { %v112_v14 = vpop.f32.mrb[4].mxu0 }
  0xe3   :  { %v121_v15 = vmul.f32 0.70710677, %v112_v14  ;;  %v280_v16 = vpop.f32.mrb[5].mxu0  ;;  %v118_v28 = vmul.f32 0.5, %v112_v14 }
  0xe5   :  { %311 = verf.f32 %v121_v15 }
  0xe7   :  { %v308_v17 = vpop.eup %307 }
  0xe8   :  { %v125_v18 = vadd.f32 1.0, %v308_v17 }
  0xea   :  { %v128_v23 = vmul.f32 %v125_v18, %v116_v20 }
  0xeb   :  { %v310_v19 = vpop.eup %309 }
  0xec   :  { %v126_v22 = vadd.f32 1.0, %v310_v19 }
  0xee   :  { %v129_v24 = vmul.f32 %v126_v22, %v117_v21 }
  0xef   :  { %v312_v25 = vpop.eup %311 }
  0xf0   :  { %v127_v26 = vadd.f32 1.0, %v312_v25  ;;  %v301_v27 = vpack.c.bf16 %v129_v24, %v128_v23 }
  0xf2   :  { %302 = vmatpush3.bf16.msra.mxu1 %v301_v27  ;;  %v130_v29 = vmul.f32 %v127_v26, %v118_v28 }
  0xf3   :  { %285 = vmatprep.subr.mxu1 %v322_v4 }
  0xf6   :  { %286 = vmatpush3.msk.msra.mxu1 %vm141_vm5, %v130_v29 }
  0xf7   :  { %288 = vmatmul.mubr.msk.f32.vlgmr.msra.gmra.mrb[0].mxu1 %vm131_vm6, %v19_v30 }
  0xf8   :  { %290 = vmatprep.mubr.msk.f32.mxu1 %vm321_vm3, %v322_v4 }
  0xfb   :  { %291 = vmatmul.mubr.msk.f32.gmra.mrb[2].mxu1 %vm131_vm6, %v20_v31 }
  0xfc   :  { %293 = vmatprep.mubr.msk.f32.mxu1 %vm321_vm3, %v322_v4 }
  0xff   :  { %294 = vmatmul.mubr.msk.f32.gmra.mrb[4].mxu1 %vm131_vm6, %v21_v32 }
 0x1ca   :  { %v211_v33 = vpop.f32.mrb[0].mxu1 }
 0x1cb   :  { %v228_v34 = vmul.f32 0.70710677, %v211_v33  ;;  %v289_v35 = vpop.f32.mrb[1].mxu1  ;;  %v225_v43 = vmul.f32 0.5, %v211_v33 }
 0x1cd   :  { %313 = verf.f32 %v228_v34 }
 0x1ce   :  { %v216_v36 = vpop.f32.mrb[2].mxu1 }
 0x1cf   :  { %v229_v37 = vmul.f32 0.70710677, %v216_v36  ;;  %v292_v38 = vpop.f32.mrb[3].mxu1  ;;  %v226_v47 = vmul.f32 0.5, %v216_v36 }
 0x1d1   :  { %315 = verf.f32 %v229_v37 }
 0x1d2   :  { %v221_v39 = vpop.f32.mrb[4].mxu1 }
 0x1d3   :  { %v230_v40 = vmul.f32 0.70710677, %v221_v39  ;;  %v295_v41 = vpop.f32.mrb[5].mxu1  ;;  %v227_v51 = vmul.f32 0.5, %v221_v39 }
 0x1d5   :  { %317 = verf.f32 %v230_v40 }
 0x1d7   :  { %v314_v42 = vpop.eup %313 }
 0x1d8   :  { %v234_v44 = vadd.f32 1.0, %v314_v42 }
 0x1da   :  { %v237_v45 = vmul.f32 %v234_v44, %v225_v43 }
 0x1db   :  { %v316_v46 = vpop.eup %315 }
 0x1dc   :  { %241 = vst.msk [vmem:[%s385_s3] sm:$0xff] %vm240_vm7, %v237_v45  ;;  %v235_v48 = vadd.f32 1.0, %v316_v46 }
 0x1de   :  { %v238_v49 = vmul.f32 %v235_v48, %v226_v47 }
 0x1df   :  { %v318_v50 = vpop.eup %317 }
 0x1e0   :  { %242 = vst.msk [vmem:[%s385_s3 + $0x8] sm:$0xff] %vm240_vm7, %v238_v49  ;;  %v236_v52 = vadd.f32 1.0, %v318_v50 }
 0x1e2   :  { %v239_v53 = vmul.f32 %v236_v52, %v227_v51 }
 0x1e4   :  { %244 = vst.msk [vmem:[%s385_s3 + $0x10] sm:$0xf] %vm243_vm8, %v239_v53 }

</bundles_post_ra>
